<compile_context>
chip_gen: v7x
topology: tpu7x:2x2x1
jax: 0.10.0
libtpu: 0.0.40
codegen_flags: <defaults>
</compile_context>

<pallas_src>
import jax
import jax.numpy as jnp
from jax.experimental import pallas as pl
from jax.experimental.pallas import tpu as pltpu


def _round_up(n, m):
    return ((n + m - 1) // m) * m


def net_forward(x, params, block_n=4096):
    """Forward pass of Net. x: (N, 1) float32. params: dict with w1,b1,w2,b2,w3,b3
    stored PyTorch-equivalently as (in, out) weights and (1, out) biases."""
    n, d_in = x.shape
    h1 = params["w1"].shape[1]
    h2 = params["w2"].shape[1]
    d_out = params["w3"].shape[1]
    assert d_in == 1 and d_out == 1 and h1 == h2, "kernel is specialized to 1 -> H -> H -> 1"
    h = h1

    # ---- pack all parameters into one (H, H+5) f32 slab: one DMA, one VMEM block.
    # columns: [0:h) = W2^T, h = W1^T, h+1 = b1^T, h+2 = b2^T, h+3 = W3, h+4 = b3.
    w2_k = params["w2"].T.astype(jnp.float32)                                  # (h, h)
    w1_k = params["w1"].T.astype(jnp.float32)                                  # (h, 1)
    b1_k = params["b1"].T.astype(jnp.float32)                                  # (h, 1)
    b2_k = params["b2"].T.astype(jnp.float32)                                  # (h, 1)
    w3_k = params["w3"].astype(jnp.float32)                                    # (h, 1)
    b3_k = jnp.broadcast_to(params["b3"].astype(jnp.float32).reshape(1, 1), (h, 1))
    packed = jnp.concatenate([w2_k, w1_k, b1_k, b2_k, w3_k, b3_k], axis=1)     # (h, h+5)
    n_cols = h + 5

    # ---- minimal padding: batch lives on lanes, pad only to the 128-lane quantum.
    n_pad = _round_up(n, 128)
    x_t = x.astype(jnp.float32).reshape(1, n)          # (N,1) -> (1,N) is a free reshape
    if n_pad != n:
        x_t = jnp.pad(x_t, ((0, 0), (0, n_pad - n)))

    # ---- tile sizing: big tiles amortize per-step overhead; keep >=2 grid steps
    # (v7x has 2 TensorCores and double-buffering needs >=2 steps).
    block_n = _round_up(max(128, min(block_n, n_pad)), 128)
    block_n = min(block_n, n_pad)
    if n_pad >= 256:
        block_n = min(block_n, _round_up(pl.cdiv(n_pad, 2), 128))
    grid = (pl.cdiv(n_pad, block_n),)

    def mlp_kernel(x_ref, p_ref, o_ref):
        xt = x_ref[...]                                   # (1, Nt) — batch on lanes
        w2 = p_ref[:, 0:h]                                # (h, h)
        w1 = p_ref[:, h:h + 1]                            # (h, 1)
        b1 = p_ref[:, h + 1:h + 2]                        # (h, 1)
        b2 = p_ref[:, h + 2:h + 3]                        # (h, 1)
        w3 = p_ref[:, h + 3:h + 4]                        # (h, 1)
        b3 = p_ref[0:1, h + 4:h + 5]                      # (1, 1)

        # Layer 1: in_features = 1 -> outer product; pure VPU broadcast FMA.
        a1 = jnp.tanh(w1 * xt + b1)                       # (h, Nt)
        # Layer 2: dense HxH against a lane-wide batch tile -> MXU.
        a2 = jnp.tanh(jnp.dot(w2, a1, preferred_element_type=jnp.float32) + b2)
        # Layer 3: out_features = 1 -> weighted sublane sum (VPU/XLU, off the MXU).
        y = jnp.sum(w3 * a2, axis=0, keepdims=True) + b3  # (1, Nt)
        o_ref[...] = y.astype(o_ref.dtype)

    in_specs = [
        pl.BlockSpec((1, block_n), lambda i: (0, i)),     # x^T batch tile
        pl.BlockSpec((h, n_cols), lambda i: (0, 0)),      # packed params (single block)
    ]
    out_specs = pl.BlockSpec((1, block_n), lambda i: (0, i))

    cost = pl.CostEstimate(
        flops=2 * n_pad * (d_in * h + h * h + h * d_out),
        transcendentals=n_pad * 2 * h,
        bytes_accessed=4 * n_pad * (d_in + d_out) + 4 * h * n_cols,
    )

    y_t = pl.pallas_call(
        mlp_kernel,
        out_shape=jax.ShapeDtypeStruct((1, n_pad), jnp.float32),
        grid=grid,
        in_specs=in_specs,
        out_specs=out_specs,
        compiler_params=pltpu.CompilerParams(
            dimension_semantics=("parallel",),
            vmem_limit_bytes=32 * 1024 * 1024,
        ),
        cost_estimate=cost,
    )(x_t, packed)

    return y_t[:, :n].T                                   # (N, 1)


def init_params(key, layer_sizes):
    """PyTorch-Linear-style init: U(-1/sqrt(fan_in), 1/sqrt(fan_in)).
    Weights stored as (in, out), biases as (1, out)."""
    params = {}
    keys = jax.random.split(key, 6)
    for i, (d_in, d_out) in enumerate(zip(layer_sizes[:-1], layer_sizes[1:]), start=1):
        bound = 1.0 / (d_in ** 0.5)
        params[f"w{i}"] = jax.random.uniform(
            keys[2 * (i - 1)], (d_in, d_out), jnp.float32, -bound, bound
        )
        params[f"b{i}"] = jax.random.uniform(
            keys[2 * (i - 1) + 1], (1, d_out), jnp.float32, -bound, bound
        )
    return params


if __name__ == "__main__":
    # Poisson-1D PINN sizes: scalar input -> 32 -> 32 -> scalar output.
    layer_sizes = [1, 32, 32, 1]
    batch = 8

    key = jax.random.PRNGKey(0)
    k_x, k_p = jax.random.split(key)
    x = jax.random.uniform(k_x, (batch, layer_sizes[0]), jnp.float32)
    params = init_params(k_p, layer_sizes)

    y = net_forward(x, params)
    jax.block_until_ready(y)

    # Pure-JAX reference of the same math (matches nn.Linear with these params).
    hh = jnp.tanh(x @ params["w1"] + params["b1"])
    hh = jnp.tanh(hh @ params["w2"] + params["b2"])
    y_ref = hh @ params["w3"] + params["b3"]
    assert y.shape == (batch, layer_sizes[-1])
    assert jnp.allclose(y, y_ref, atol=1e-5, rtol=1e-5)

    print("KERNEL_OK")
</pallas_src>

<mosaic_0001>
module attributes {stable_mosaic.version = 11 : i64} {
  func.func @mlp_kernel(%arg0: i32, %arg1: memref<1x128xf32, #tpu.memory_space<vmem>>, %arg2: memref<32x37xf32, #tpu.memory_space<vmem>>, %arg3: memref<1x128xf32, #tpu.memory_space<vmem>>) attributes {dimension_semantics = [#tpu.dimension_semantics<parallel>], iteration_bounds = array<i64: 1>, scalar_prefetch = 0 : i64, scratch_operands = 0 : i64, tpu.core_type = #tpu.core_type<tc>, window_params = [{transform_indices = @transform_0, window_bounds = array<i64: 1, 128>}, {pipeline_mode = #tpu.pipeline_mode<synchronous>, transform_indices = @transform_1, window_bounds = array<i64: 32, 37>}, {transform_indices = @transform_2, window_bounds = array<i64: 1, 128>}]} {
    %c0 = arith.constant 0 : index
    %c0_0 = arith.constant 0 : index
    %0 = vector.load %arg1[%c0, %c0_0] : memref<1x128xf32, #tpu.memory_space<vmem>>, vector<1x128xf32>
    %c0_1 = arith.constant 0 : index
    %c0_2 = arith.constant 0 : index
    %1 = vector.load %arg2[%c0_1, %c0_2] : memref<32x37xf32, #tpu.memory_space<vmem>>, vector<32x32xf32>
    %c0_3 = arith.constant 0 : index
    %c32 = arith.constant 32 : index
    %2 = vector.load %arg2[%c0_3, %c32] : memref<32x37xf32, #tpu.memory_space<vmem>>, vector<32x1xf32>
    %c0_4 = arith.constant 0 : index
    %c33 = arith.constant 33 : index
    %3 = vector.load %arg2[%c0_4, %c33] : memref<32x37xf32, #tpu.memory_space<vmem>>, vector<32x1xf32>
    %c0_5 = arith.constant 0 : index
    %c34 = arith.constant 34 : index
    %4 = vector.load %arg2[%c0_5, %c34] : memref<32x37xf32, #tpu.memory_space<vmem>>, vector<32x1xf32>
    %c0_6 = arith.constant 0 : index
    %c35 = arith.constant 35 : index
    %5 = vector.load %arg2[%c0_6, %c35] : memref<32x37xf32, #tpu.memory_space<vmem>>, vector<32x1xf32>
    %c0_7 = arith.constant 0 : index
    %c36 = arith.constant 36 : index
    %6 = vector.load %arg2[%c0_7, %c36] : memref<32x37xf32, #tpu.memory_space<vmem>>, vector<1x1xf32>
    %7 = vector.broadcast %2 : vector<32x1xf32> to vector<32x128xf32>
    %8 = vector.broadcast %0 : vector<1x128xf32> to vector<32x128xf32>
    %9 = arith.mulf %7, %8 : vector<32x128xf32>
    %10 = vector.broadcast %3 : vector<32x1xf32> to vector<32x128xf32>
    %11 = arith.addf %9, %10 : vector<32x128xf32>
    %12 = math.tanh %11 : vector<32x128xf32>
    %cst = arith.constant dense<0.000000e+00> : vector<32x128xf32>
    %13 = tpu.matmul %1, %12, %cst {dimension_numbers = #tpu.dot_dimension_numbers<[1], [0], [0], [1], [0, 0, 1, 1], [], []>} : vector<32x32xf32>, vector<32x128xf32>, vector<32x128xf32> -> vector<32x128xf32>
    %14 = vector.broadcast %4 : vector<32x1xf32> to vector<32x128xf32>
    %15 = arith.addf %13, %14 : vector<32x128xf32>
    %16 = math.tanh %15 : vector<32x128xf32>
    %17 = vector.broadcast %5 : vector<32x1xf32> to vector<32x128xf32>
    %18 = arith.mulf %17, %16 : vector<32x128xf32>
    %cst_8 = arith.constant dense<0.000000e+00> : vector<128xf32>
    %19 = vector.multi_reduction <add>, %18, %cst_8 [0] : vector<32x128xf32> to vector<128xf32>
    %20 = vector.shape_cast %19 : vector<128xf32> to vector<1x128xf32>
    %21 = vector.broadcast %6 : vector<1x1xf32> to vector<1x128xf32>
    %22 = arith.addf %20, %21 : vector<1x128xf32>
    %c0_9 = arith.constant 0 : index
    %c0_10 = arith.constant 0 : index
    %23 = vector.load %arg3[%c0_9, %c0_10] : memref<1x128xf32, #tpu.memory_space<vmem>>, vector<1x128xf32>
    tpu.vector_store %arg3[%c0_9, %c0_10], %22 {strides = array<i32>} : memref<1x128xf32, #tpu.memory_space<vmem>>, vector<1x128xf32>,
    return
  }
  func.func @transform_0(%arg0: i32) -> (i32, i32) {
    %c0_i32 = arith.constant 0 : i32
    %c0_i32_0 = arith.constant 0 : i32
    return %c0_i32, %arg0 : i32, i32
  }
  func.func @transform_1(%arg0: i32) -> (i32, i32) {
    %c0_i32 = arith.constant 0 : i32
    %c0_i32_0 = arith.constant 0 : i32
    %c0_i32_1 = arith.constant 0 : i32
    return %c0_i32, %c0_i32_0 : i32, i32
  }
  func.func @transform_2(%arg0: i32) -> (i32, i32) {
    %c0_i32 = arith.constant 0 : i32
    %c0_i32_0 = arith.constant 0 : i32
    return %c0_i32, %arg0 : i32, i32
  }
}

</mosaic_0001>

<bundles_post_ra>
// kernel: tpu_custom_call.1
= control target key start
LH: loop header
LB: loop body
LE: loop exit
PB: predicated region body
PF: predicated region fallthrough
CT: control target
= control target key end

     0   :  { %7 = vsyncpa [#allocation3], 0  ;;  %s498_s0 = inlined_call_operand.hbm [shape: f32[1,128], index: 0, kind: input, shape index: {}]   ;;  %s499_s1 = inlined_call_operand.hbm [shape: f32[32,37], index: 1, kind: input, shape index: {}]   ;;  %s500_s2 = inlined_call_operand.hbm [shape: f32[1,128], index: 2, kind: output, shape index: {}]  }
   0x1   :  { %8 = vsyncpa [#allocation6], 0 }
   0x2   :  { %9 = vsyncpa [#allocation4], 0  ;;  %s412_s9 = smov [#allocation2]   ;;  %s413_s11 = smov [#allocation5]  }
   0x3   :  { %s16_s10 = sshll.u32 %s412_s9, 4  ;;  %s25_s12 = sshll.u32 %s413_s11, 4  ;;  %s17_s10 = int_to_ptr.vmem [resolvable:$true] %s16_s10  ;;  %s437_s12 = int_to_ptr.vmem [resolvable:$true] %s25_s12 }
   0x4   :  { %s340_s15 = scalar_lea.hbm %s498_s0, 16 }
   0x5   :  { %p341_p0 = scmp.ne.s32.totalorder %s498_s0, %s340_s15  ;;  %p344_p1 = scmp.lt.u32.totalorder %s340_s15, %s498_s0 }
   0x7   :  { %p346_p2 = pnand %p344_p1, %p341_p0 }
   0x9   :  { %349 = shalt.err (!%p346_p2)
}
   0xa   :  { %s350_s20 = scalar_lea.vmem %s17_s10, 16  ;;  %s354_s21 = scalar_lea.vmem %s17_s10, 32 }
   0xb   :  { %p351_p3 = scmp.ne.s32.totalorder %s17_s10, %s350_s20  ;;  %p355_p4 = scmp.lt.s32.totalorder %s17_s10, %s17_s10 }
   0xc   :  { %p356_p5 = scmp.lt.s32.totalorder %s354_s21, %s350_s20 }
   0xe   :  { %p357_p6 = por %p356_p5, %p355_p4 }
  0x10   :  { %p358_p7 = pnand %p357_p6, %p351_p3 }
  0x12   :  { %361 = shalt.err (!%p358_p7)
}
  0x13   :  { %19 = dma.hbm_to_vmem [thread:$0]  %s498_s0, 16, %s17_s10, [#allocation3]  }
  0x14   :  { %s362_s26 = scalar_lea.hbm %s499_s1, 512 }
  0x15   :  { %p363_p8 = scmp.ne.s32.totalorder %s499_s1, %s362_s26  ;;  %p366_p9 = scmp.lt.u32.totalorder %s362_s26, %s499_s1 }
  0x17   :  { %p368_p10 = pnand %p366_p9, %p363_p8 }
  0x19   :  { %371 = shalt.err (!%p368_p10)
}
  0x1a   :  { %s372_s3 = scalar_lea.vmem %s437_s12, 512  ;;  %p377_p12 = scmp.lt.s32.totalorder %s437_s12, %s437_s12 }
  0x1b   :  { %p373_p11 = scmp.ne.s32.totalorder %s437_s12, %s372_s3  ;;  %p378_p13 = scmp.lt.s32.totalorder %s372_s3, %s372_s3 }
  0x1d   :  { %p379_p0 = por %p378_p13, %p377_p12 }
  0x1f   :  { %p380_p1 = pnand %p379_p0, %p373_p11 }
  0x21   :  { %383 = shalt.err (!%p380_p1)
}
  0x22   :  { %s414_s0 = smov 128   ;;  %s415_s4 = smov 8  }
  0x23   :  { %31 = dma.hbm_to_vmem [thread:$0]  %s499_s1, 512, %s437_s12, [#allocation6], %s414_s0, %s414_s0, %s415_s4  }
  0x24   :  { %406 = dma.done.wait [#allocation3], 16  }
  0x25   :  { %407 = vsyncadd [#allocation3], 4294967280 }
  0x26   :  { %408 = dma.done.wait [#allocation6], 512  }
  0x27   :  { %409 = vsyncadd [#allocation6], 4294966784  ;;  %v416_v0 = vmov 33   ;;  %v417_v1 = vmov 32   ;;  %v39_v2 = vld [vmem:[#allocation5] sm:$0xff]  ;;  %v468_v3 = vld [vmem:[#allocation5 + $0x8] sm:$0xff] }
  0x28   :  { %314 = vset.pattern.permute.xlu1 %v416_v0  ;;  %313 = vset.pattern.permute.xlu0 %v417_v1  ;;  %v41_v4 = vld [vmem:[#allocation5 + $0x10] sm:$0xff]  ;;  %v472_v5 = vld [vmem:[#allocation5 + $0x18] sm:$0xff]  ;;  %vm114_vm0 = vcmask 261120   ;;  %v418_v6 = vmov 34   ;;  %v419_v7 = vmov 35   ;;  %v420_v8 = vmov 36  }
  0x29   :  { %75 = vperm.xlu1 %314, %v39_v2   ;;  %46 = vperm.xlu0 %313, %v39_v2   ;;  %v43_v9 = vld [vmem:[#allocation5] sm:$0x1]  ;;  %v264_v10 = vld [vmem:[#allocation2] ss:$0 sm:$0xff]  ;;  %s421_s1 = smov [#allocation7]  }
  0x2a   :  { %285 = vmatprep.mubr.msk.f32.mxu0 %vm114_vm0, %v39_v2  ;;  %288 = vmatprep.mubr.msk.f32.mxu1 %vm114_vm0, %v41_v4  ;;  %s254_s7 = sshll.u32 %s421_s1, 4  ;;  %s255_s7 = int_to_ptr.vmem [resolvable:$true] %s254_s7 }
  0x2b   :  { %s384_s8 = scalar_lea.vmem %s255_s7, 16  ;;  %s388_s9 = scalar_lea.vmem %s255_s7, 32 }
  0x2c   :  { %p385_p2 = scmp.ne.s32.totalorder %s255_s7, %s384_s8  ;;  %p389_p3 = scmp.lt.s32.totalorder %s255_s7, %s255_s7 }
  0x2d   :  { %79 = vperm.xlu1 %314, %v468_v3   ;;  %51 = vperm.xlu0 %313, %v468_v3   ;;  %p390_p4 = scmp.lt.s32.totalorder %s388_s9, %s384_s8 }
  0x2f   :  { %p391_p5 = por %p390_p4, %p389_p3 }
  0x31   :  { %315 = vset.pattern.permute.xlu1 %v417_v1  ;;  %56 = vperm.xlu0 %313, %v41_v4   ;;  %p392_p6 = pnand %p391_p5, %p385_p2 }
  0x32   :  { %61 = vperm.xlu1 %315, %v472_v5  }
  0x35   :  { %316 = vset.pattern.permute.xlu0 %v416_v0 }
  0x36   :  { %317 = vset.pattern.permute.xlu1 %v416_v0  ;;  %83 = vperm.xlu0 %316, %v41_v4  }
  0x37   :  { %87 = vperm.xlu1 %317, %v472_v5  }
  0x3a   :  { %319 = vset.pattern.permute.xlu0 %v418_v6 }
  0x3b   :  { %318 = vset.pattern.permute.xlu1 %v418_v6  ;;  %103 = vperm.xlu0 %319, %v468_v3  }
  0x3c   :  { %99 = vperm.xlu1 %318, %v39_v2  }
  0x3f   :  { %320 = vset.pattern.permute.xlu0 %v419_v7 }
  0x40   :  { %107 = vperm.xlu1 %318, %v41_v4   ;;  %213 = vperm.xlu0 %320, %v39_v2  }
  0x44   :  { %111 = vperm.xlu1 %318, %v472_v5   ;;  %225 = vperm.xlu0 %320, %v472_v5  }
  0x48   :  { %321 = vset.pattern.permute.xlu1 %v419_v7  ;;  %323 = vset.pattern.permute.xlu0 %v420_v8 }
  0x49   :  { %217 = vperm.xlu1 %321, %v468_v3  }
  0x4d   :  { %221 = vperm.xlu1 %321, %v41_v4  }
  0x51   :  { %322 = vset.pattern.permute.xlu1 %v420_v8 }
  0x52   :  { %243 = vperm.xlu1 %322, %v43_v9  }
  0xa8   :  { %v76_v11 = vpop.permute.xlu1 %75  ;;  %v47_v12 = vpop.permute.xlu0 %46 }
  0xa9   :  { %v70_v13 = vmul.f32 %v264_v10, %v47_v12 }
  0xab   :  { %v90_v14 = vadd.f32 %v76_v11, %v70_v13 }
  0xac   :  { %v80_v15 = vpop.permute.xlu1 %79  ;;  %v52_v16 = vpop.permute.xlu0 %51 }
  0xad   :  { %v71_v17 = vmul.f32 %v264_v10, %v52_v16  ;;  %324 = vtanh.f32 %v90_v14 }
  0xaf   :  { %v91_v18 = vadd.f32 %v80_v15, %v71_v17 }
  0xb0   :  { %v57_v19 = vpop.permute.xlu0 %56 }
  0xb1   :  { %326 = vtanh.f32 %v91_v18  ;;  %v62_v20 = vpop.permute.xlu1 %61  ;;  %v72_v21 = vmul.f32 %v264_v10, %v57_v19 }
  0xb2   :  { %v73_v22 = vmul.f32 %v264_v10, %v62_v20 }
  0xb5   :  { %v84_v23 = vpop.permute.xlu0 %83 }
  0xb6   :  { %v92_v24 = vadd.f32 %v84_v23, %v72_v21  ;;  %v88_v25 = vpop.permute.xlu1 %87 }
  0xb7   :  { %v93_v26 = vadd.f32 %v88_v25, %v73_v22  ;;  %v325_v27 = vpop.eup %324 }
  0xb8   :  { %328 = vtanh.f32 %v92_v24 }
  0xb9   :  { %330 = vtanh.f32 %v93_v26 }
  0xba   :  { %v104_v35 = vpop.permute.xlu0 %103 }
  0xbb   :  { %v327_v28 = vpop.eup %326  ;;  %v100_v33 = vpop.permute.xlu1 %99 }
  0xbc   :  { %v291_v29 = vpack.c.bf16 %v327_v28, %v325_v27 }
  0xbe   :  { %292 = vmatprep.subr.bf16.mxu0 %v291_v29  ;;  %299 = vmatprep.subr.bf16.mxu1 %v291_v29 }
  0xbf   :  { %294 = vmatpush3.bf16.msra.mxu0 %v291_v29  ;;  %301 = vmatpush3.bf16.msra.mxu1 %v291_v29  ;;  %v108_v34 = vpop.permute.xlu1 %107  ;;  %v214_v46 = vpop.permute.xlu0 %213 }
  0xc2   :  { %v329_v30 = vpop.eup %328 }
  0xc3   :  { %v331_v31 = vpop.eup %330  ;;  %v112_v41 = vpop.permute.xlu1 %111 }
  0xc4   :  { %v295_v32 = vpack.c.bf16 %v331_v31, %v329_v30  ;;  %v226_v54 = vpop.permute.xlu0 %225 }
  0xc6   :  { %296 = vmatprep.subr.bf16.mxu0 %v295_v32  ;;  %300 = vmatprep.subr.bf16.mxu1 %v295_v32 }
  0xc7   :  { %298 = vmatpush3.bf16.msra.mxu0 %v295_v32  ;;  %302 = vmatpush3.bf16.msra.mxu1 %v295_v32 }
  0xc8   :  { %v218_v45 = vpop.permute.xlu1 %217 }
  0xca   :  { %286 = vmatmul.mubr.msk.f32.vlgmr.msra.gmra.mrb[0].mxu0 %vm114_vm0, %v468_v3  ;;  %289 = vmatmul.mubr.msk.f32.vlgmr.msra.gmra.mrb[0].mxu1 %vm114_vm0, %v472_v5 }
  0xcc   :  { %v222_v53 = vpop.permute.xlu1 %221 }
  0xd1   :  { %v244_v1 = vpop.permute.xlu1 %243 }
 0x19d   :  { %v287_v36 = vpop.f32.mrb[0].mxu0  ;;  %v290_v37 = vpop.f32.mrb[0].mxu1 }
 0x19e   :  { %v195_v38 = vadd.f32 %v287_v36, %v104_v35  ;;  %v189_v39 = vpop.f32.mrb[1].mxu0  ;;  %v199_v40 = vpop.f32.mrb[1].mxu1  ;;  %v205_v44 = vadd.f32 %v290_v37, %v112_v41 }
 0x19f   :  { %v190_v42 = vadd.f32 %v189_v39, %v100_v33  ;;  %v200_v43 = vadd.f32 %v199_v40, %v108_v34 }
 0x1a0   :  { %332 = vtanh.f32 %v195_v38 }
 0x1a1   :  { %334 = vtanh.f32 %v190_v42 }
 0x1a2   :  { %336 = vtanh.f32 %v200_v43 }
 0x1a3   :  { %338 = vtanh.f32 %v205_v44 }
 0x1aa   :  { %v333_v47 = vpop.eup %332 }
 0x1ab   :  { %v229_v48 = vmul.f32 %v333_v47, %v218_v45  ;;  %v335_v49 = vpop.eup %334 }
 0x1ac   :  { %v337_v50 = vpop.eup %336  ;;  %v228_v51 = vmul.f32 %v335_v49, %v214_v46 }
 0x1ad   :  { %v339_v52 = vpop.eup %338  ;;  %v230_v56 = vmul.f32 %v337_v50, %v222_v53 }
 0x1ae   :  { %v232_v55 = vadd.f32 %v229_v48, %v228_v51  ;;  %v231_v58 = vmul.f32 %v339_v52, %v226_v54 }
 0x1b0   :  { %v233_v57 = vadd.f32 %v232_v55, %v230_v56 }
 0x1b2   :  { %v234_v59 = vadd.f32 %v233_v57, %v231_v58 }
 0x1b4   :  { %v235_v60 = vrot.slane %v234_v59, 4 }
 0x1b6   :  { %v236_v61 = vadd.f32 %v235_v60, %v234_v59 }
 0x1b8   :  { %v237_v62 = vrot.slane %v236_v61, 2 }
 0x1ba   :  { %v238_v63 = vadd.f32 %v237_v62, %v236_v61 }
 0x1bc   :  { %v239_v0 = vrot.slane %v238_v63, 1 }
 0x1be   :  { %v240_v2 = vadd.f32 %v239_v0, %v238_v63 }
 0x1c0   :  { %v246_v3 = vadd.f32 %v244_v1, %v240_v2 }
 0x1c2   :  { %247 = vst [vmem:[#allocation7] sm:$0x1] %v246_v3 }
 0x1c3   :  { %395 = shalt.err (!%p392_p6)
}
 0x1c4   :  { %s396_s12 = scalar_lea.hbm %s500_s2, 16 }
 0x1c5   :  { %p397_p7 = scmp.ne.s32.totalorder %s500_s2, %s396_s12  ;;  %p400_p8 = scmp.lt.u32.totalorder %s396_s12, %s500_s2 }
 0x1c7   :  { %p402_p9 = pnand %p400_p8, %p397_p7 }
 0x1c9   :  { %405 = shalt.err (!%p402_p9)
}
 0x1ca   :  { %257 = dma.vmem_to_hbm [thread:$0]  %s255_s7, 16, %s500_s2, [#allocation4]  }
 0x1cb   :  { %410 = dma.done.wait [#allocation4], 16  }
 0x1cc   :  { %411 = vsyncadd [#allocation4], 4294967280 }
 0x1cd   :  { %261 = vsyncpa [#allocation3], 1 }
 0x1ce   :  { %262 = vsyncpa [#allocation6], 1 }
 0x1cf   :  { %263 = vsyncpa [#allocation4], 1 }

</bundles_post_ra>
